<compile_context>
chip_gen: v5e
topology: v5e:2x2
jax: 0.10.0
libtpu: 0.0.40
codegen_flags: <defaults>
</compile_context>

<pallas_src>
import numpy as np
import jax
import jax.numpy as jnp
from jax.experimental import pallas as pl
from jax.experimental.pallas import tpu as pltpu


# ----------------------------------------------------------------------------
# Pallas kernel: whole tree for one batch tile, batch on the lane axis.
#   x_ref      : (NI+1, TB)        features (constant-1 row appended), transposed
#   w_ref      : (NINT_P, NI+1)    alpha/bias-folded per-node weights (padded)
#   pright_ref : (D*NLEAF, NINT_P) one-hot: ancestor node of leaf l at depth d
#                                  iff the leaf's path goes RIGHT there
#   pleft_ref  : (D*NLEAF, NINT_P) same, for LEFT steps
#   probs_ref  : (NO, NLEAF)       leaf prob_dist parameters, transposed
#   o_ref      : (NO, TB)          output (batch on lanes)
# ----------------------------------------------------------------------------
def ddt_kernel(x_ref, w_ref, pright_ref, pleft_ref, probs_ref, o_ref):
    nleaf = probs_ref.shape[1]
    depth = pright_ref.shape[0] // nleaf

    # Gate value of every internal node for the whole batch tile (MXU + EUP).
    z = jnp.dot(w_ref[...], x_ref[...], preferred_element_type=jnp.float32)
    vals = jax.nn.sigmoid(z)                                  # (NINT_P, TB) f32

    # Hard routing + gate folded per node BEFORE the gather (exact threshold):
    #   right contribution = val   if val >= 0.5 else 0
    #   left  contribution = 1-val if val <  0.5 else 0
    go_right = vals >= 0.5
    right_c = jnp.where(go_right, vals, 0.0)
    left_c = jnp.where(go_right, 0.0, 1.0 - vals)

    # One fused gather for all depths: contrib[d*NLEAF + l, b] is the gate
    # value at depth d along leaf l's path if the hard decision matches the
    # path, else exactly 0 (zeros propagate exactly through the one-hot matmul).
    contrib = (
        jnp.dot(pright_ref[...], right_c, preferred_element_type=jnp.float32)
        + jnp.dot(pleft_ref[...], left_c, preferred_element_type=jnp.float32)
    )                                                          # (D*NLEAF, TB)

    # Product over depths: exactly one leaf per column stays nonzero.
    # NLEAF == 8 -> each slice is whole vregs; D-1 multiplies total.
    w_leaf = contrib[0:nleaf]
    for d in range(1, depth):
        w_leaf = w_leaf * contrib[d * nleaf:(d + 1) * nleaf]   # (NLEAF, TB)

    # out[:, b] = gate_product[b] * prob_dist[leaf(b), :]
    out = jnp.dot(probs_ref[...], w_leaf, preferred_element_type=jnp.float32)
    o_ref[...] = out.astype(o_ref.dtype)                       # (NO, TB)


def ddt_forward(x, w_aug_t, p_right, p_left, probs_t, *, tile_b=512):
    """x: (B, NI) f32. Returns (B, NO) f32."""
    B, NI = x.shape
    NINT_P, NIA = w_aug_t.shape
    assert NIA == NI + 1
    DNL = p_right.shape[0]
    NO, NLEAF = probs_t.shape

    tile_b = min(tile_b, B)
    assert B % tile_b == 0, "batch must be a multiple of the batch tile"

    # Append constant-1 feature (bias folded into the matmul) and put the
    # batch on the last (lane) axis.
    x_aug_t = jnp.concatenate([x.T, jnp.ones((1, B), x.dtype)], axis=0)

    out_t = pl.pallas_call(
        ddt_kernel,
        out_shape=jax.ShapeDtypeStruct((NO, B), jnp.float32),
        grid=(B // tile_b,),
        in_specs=[
            pl.BlockSpec((NIA, tile_b), lambda i: (0, i)),       # x^T: tiled over batch (lanes)
            pl.BlockSpec((NINT_P, NIA), lambda i: (0, 0)),       # weights: broadcast
            pl.BlockSpec((DNL, NINT_P), lambda i: (0, 0)),       # right-step one-hot
            pl.BlockSpec((DNL, NINT_P), lambda i: (0, 0)),       # left-step one-hot
            pl.BlockSpec((NO, NLEAF), lambda i: (0, 0)),         # leaf prob dists^T
        ],
        out_specs=pl.BlockSpec((NO, tile_b), lambda i: (0, i)),  # lane-dense stores
        compiler_params=pltpu.CompilerParams(
            dimension_semantics=("parallel",)),
    )(x_aug_t, w_aug_t, p_right, p_left, probs_t)
    return out_t.T                                               # (B, NO)


# ----------------------------------------------------------------------------
# Host-side parameter / static-tree-structure packing (done once).
# Heap layout: left child 2n+1, right child 2n+2.
# ----------------------------------------------------------------------------
def build_params(wt, b, alpha, probs):
    """Fold alpha & bias:  sigmoid(alpha*(x.w + b)) == sigmoid([x,1].[alpha*w; alpha*b])."""
    wt = np.asarray(wt, np.float32)
    b = np.asarray(b, np.float32)
    alpha = np.asarray(alpha, np.float32)
    probs = np.asarray(probs, np.float32)
    NI, NINT = wt.shape
    NINT_P = ((NINT + 7) // 8) * 8                 # pad node axis to sublane multiple
    w_aug = np.concatenate([wt * alpha, alpha * b], axis=0)   # (NI+1, NINT)
    w_aug_t = np.zeros((NINT_P, NI + 1), np.float32)
    w_aug_t[:NINT, :] = w_aug.T
    probs_t = probs.T.copy()                        # (NO, NLEAF)
    return jnp.asarray(w_aug_t), jnp.asarray(probs_t), NINT_P


def build_tree_constants(max_depth, n_internal_padded):
    n_leaf = 2 ** max_depth
    p_right = np.zeros((max_depth * n_leaf, n_internal_padded), np.float32)
    p_left = np.zeros((max_depth * n_leaf, n_internal_padded), np.float32)
    for leaf in range(n_leaf):
        node = 0
        for d in range(max_depth):
            bit = (leaf >> (max_depth - 1 - d)) & 1
            row = d * n_leaf + leaf
            if bit:
                p_right[row, node] = 1.0
            else:
                p_left[row, node] = 1.0
            node = 2 * node + 1 + bit
    return jnp.asarray(p_right), jnp.asarray(p_left)


# Pure-numpy reference following the recursive PyTorch forward (exploration off).
def ref_forward_row(x_row, wt, b, alpha, probs, max_depth):
    s = x_row @ wt                                            # (NINT,)
    z = alpha[0] * (s + b[0])
    vals = 1.0 / (1.0 + np.exp(-z))
    node = 0
    prod = 1.0
    for _ in range(max_depth):
        v = vals[node]
        if v >= 0.5:
            prod *= v
            node = 2 * node + 2
        else:
            prod *= (1.0 - v)
            node = 2 * node + 1
    leaf = node - (2 ** max_depth - 1)
    return prod * probs[leaf]


if __name__ == "__main__":
    num_input = 16
    num_output = 8
    max_depth = 3
    batch = 512            # 2 grid steps of 256 lanes each (keeps v7x megacore busy)
    n_internal = 2 ** max_depth - 1
    n_leaf = 2 ** max_depth

    key = jax.random.PRNGKey(0)
    kx, kw, kb, ka, kp = jax.random.split(key, 5)

    # Deterministic synthetic parameters (torch __init__ gives the shapes;
    # zeros would make the forward trivial, so use small random values).
    x = jax.random.normal(kx, (batch, num_input), dtype=jnp.float32)
    wt = 0.5 * jax.random.normal(kw, (num_input, n_internal), dtype=jnp.float32)
    b = 0.1 * jax.random.normal(kb, (1, n_internal), dtype=jnp.float32)
    alpha = jax.random.normal(ka, (1, n_internal), dtype=jnp.float32)
    probs = jax.random.normal(kp, (n_leaf, num_output), dtype=jnp.float32)

    w_aug_t, probs_t, n_internal_padded = build_params(wt, b, alpha, probs)
    p_right, p_left = build_tree_constants(max_depth, n_internal_padded)

    out = ddt_forward(x, w_aug_t, p_right, p_left, probs_t, tile_b=256)
    out = jax.block_until_ready(out)

    x_np = np.asarray(x, np.float64)
    wt_np = np.asarray(wt, np.float64)
    b_np = np.asarray(b, np.float64)
    a_np = np.asarray(alpha, np.float64)
    p_np = np.asarray(probs, np.float64)
    expected = np.stack(
        [ref_forward_row(x_np[i], wt_np, b_np, a_np, p_np, max_depth)
         for i in range(batch)])

    np.testing.assert_allclose(np.asarray(out), expected, rtol=1e-4, atol=1e-5)

    print("KERNEL_OK")
</pallas_src>

<mosaic_0001>
module attributes {stable_mosaic.version = 11 : i64} {
  func.func @ddt_kernel(%arg0: i32, %arg1: memref<17x256xf32, #tpu.memory_space<vmem>>, %arg2: memref<8x17xf32, #tpu.memory_space<vmem>>, %arg3: memref<24x8xf32, #tpu.memory_space<vmem>>, %arg4: memref<24x8xf32, #tpu.memory_space<vmem>>, %arg5: memref<8x8xf32, #tpu.memory_space<vmem>>, %arg6: memref<8x256xf32, #tpu.memory_space<vmem>>) attributes {dimension_semantics = [#tpu.dimension_semantics<parallel>], iteration_bounds = array<i64: 2>, scalar_prefetch = 0 : i64, scratch_operands = 0 : i64, tpu.core_type = #tpu.core_type<tc>, window_params = [{transform_indices = @transform_0, window_bounds = array<i64: 17, 256>}, {pipeline_mode = #tpu.pipeline_mode<synchronous>, transform_indices = @transform_1, window_bounds = array<i64: 8, 17>}, {pipeline_mode = #tpu.pipeline_mode<synchronous>, transform_indices = @transform_2, window_bounds = array<i64: 24, 8>}, {pipeline_mode = #tpu.pipeline_mode<synchronous>, transform_indices = @transform_3, window_bounds = array<i64: 24, 8>}, {pipeline_mode = #tpu.pipeline_mode<synchronous>, transform_indices = @transform_4, window_bounds = array<i64: 8, 8>}, {transform_indices = @transform_5, window_bounds = array<i64: 8, 256>}]} {
    %c0 = arith.constant 0 : index
    %c0_0 = arith.constant 0 : index
    %0 = vector.load %arg2[%c0, %c0_0] : memref<8x17xf32, #tpu.memory_space<vmem>>, vector<8x17xf32>
    %c0_1 = arith.constant 0 : index
    %c0_2 = arith.constant 0 : index
    %1 = vector.load %arg1[%c0_1, %c0_2] : memref<17x256xf32, #tpu.memory_space<vmem>>, vector<17x256xf32>
    %cst = arith.constant dense<0.000000e+00> : vector<8x256xf32>
    %2 = tpu.matmul %0, %1, %cst {dimension_numbers = #tpu.dot_dimension_numbers<[1], [0], [0], [1], [0, 0, 1, 1], [], []>} : vector<8x17xf32>, vector<17x256xf32>, vector<8x256xf32> -> vector<8x256xf32>
    %3 = arith.negf %2 : vector<8x256xf32>
    %4 = math.exp %3 : vector<8x256xf32>
    %cst_3 = arith.constant 1.000000e+00 : f32
    %5 = vector.broadcast %cst_3 : f32 to vector<8x256xf32>
    %6 = arith.addf %5, %4 : vector<8x256xf32>
    %7 = arith.divf %5, %6 : vector<8x256xf32>
    %cst_4 = arith.constant 5.000000e-01 : f32
    %8 = vector.broadcast %cst_4 : f32 to vector<8x256xf32>
    %9 = arith.cmpf oge, %7, %8 : vector<8x256xf32>
    %cst_5 = arith.constant 0.000000e+00 : f32
    %10 = vector.broadcast %cst_5 : f32 to vector<8x256xf32>
    %11 = arith.select %9, %7, %10 : vector<8x256xi1>, vector<8x256xf32>
    %cst_6 = arith.constant 1.000000e+00 : f32
    %12 = vector.broadcast %cst_6 : f32 to vector<8x256xf32>
    %13 = arith.subf %12, %7 : vector<8x256xf32>
    %cst_7 = arith.constant 0.000000e+00 : f32
    %14 = vector.broadcast %cst_7 : f32 to vector<8x256xf32>
    %15 = arith.select %9, %14, %13 : vector<8x256xi1>, vector<8x256xf32>
    %c0_8 = arith.constant 0 : index
    %c0_9 = arith.constant 0 : index
    %16 = vector.load %arg3[%c0_8, %c0_9] : memref<24x8xf32, #tpu.memory_space<vmem>>, vector<24x8xf32>
    %cst_10 = arith.constant dense<0.000000e+00> : vector<24x256xf32>
    %17 = tpu.matmul %16, %11, %cst_10 {dimension_numbers = #tpu.dot_dimension_numbers<[1], [0], [0], [1], [0, 0, 1, 1], [], []>} : vector<24x8xf32>, vector<8x256xf32>, vector<24x256xf32> -> vector<24x256xf32>
    %c0_11 = arith.constant 0 : index
    %c0_12 = arith.constant 0 : index
    %18 = vector.load %arg4[%c0_11, %c0_12] : memref<24x8xf32, #tpu.memory_space<vmem>>, vector<24x8xf32>
    %cst_13 = arith.constant dense<0.000000e+00> : vector<24x256xf32>
    %19 = tpu.matmul %18, %15, %cst_13 {dimension_numbers = #tpu.dot_dimension_numbers<[1], [0], [0], [1], [0, 0, 1, 1], [], []>} : vector<24x8xf32>, vector<8x256xf32>, vector<24x256xf32> -> vector<24x256xf32>
    %20 = arith.addf %17, %19 : vector<24x256xf32>
    %21 = vector.extract_strided_slice %20 {offsets = [0, 0], sizes = [8, 256], strides = [1, 1]} : vector<24x256xf32> to vector<8x256xf32>
    %22 = vector.extract_strided_slice %20 {offsets = [8, 0], sizes = [8, 256], strides = [1, 1]} : vector<24x256xf32> to vector<8x256xf32>
    %23 = arith.mulf %21, %22 : vector<8x256xf32>
    %24 = vector.extract_strided_slice %20 {offsets = [16, 0], sizes = [8, 256], strides = [1, 1]} : vector<24x256xf32> to vector<8x256xf32>
    %25 = arith.mulf %23, %24 : vector<8x256xf32>
    %c0_14 = arith.constant 0 : index
    %c0_15 = arith.constant 0 : index
    %26 = vector.load %arg5[%c0_14, %c0_15] : memref<8x8xf32, #tpu.memory_space<vmem>>, vector<8x8xf32>
    %cst_16 = arith.constant dense<0.000000e+00> : vector<8x256xf32>
    %27 = tpu.matmul %26, %25, %cst_16 {dimension_numbers = #tpu.dot_dimension_numbers<[1], [0], [0], [1], [0, 0, 1, 1], [], []>} : vector<8x8xf32>, vector<8x256xf32>, vector<8x256xf32> -> vector<8x256xf32>
    %c0_17 = arith.constant 0 : index
    %c0_18 = arith.constant 0 : index
    %28 = vector.load %arg6[%c0_17, %c0_18] : memref<8x256xf32, #tpu.memory_space<vmem>>, vector<8x256xf32>
    tpu.vector_store %arg6[%c0_17, %c0_18], %27 {strides = array<i32>} : memref<8x256xf32, #tpu.memory_space<vmem>>, vector<8x256xf32>,
    return
  }
  func.func @transform_0(%arg0: i32) -> (i32, i32) {
    %c0_i32 = arith.constant 0 : i32
    %c0_i32_0 = arith.constant 0 : i32
    return %c0_i32, %arg0 : i32, i32
  }
  func.func @transform_1(%arg0: i32) -> (i32, i32) {
    %c0_i32 = arith.constant 0 : i32
    %c0_i32_0 = arith.constant 0 : i32
    %c0_i32_1 = arith.constant 0 : i32
    return %c0_i32, %c0_i32_0 : i32, i32
  }
  func.func @transform_2(%arg0: i32) -> (i32, i32) {
    %c0_i32 = arith.constant 0 : i32
    %c0_i32_0 = arith.constant 0 : i32
    %c0_i32_1 = arith.constant 0 : i32
    return %c0_i32, %c0_i32_0 : i32, i32
  }
  func.func @transform_3(%arg0: i32) -> (i32, i32) {
    %c0_i32 = arith.constant 0 : i32
    %c0_i32_0 = arith.constant 0 : i32
    %c0_i32_1 = arith.constant 0 : i32
    return %c0_i32, %c0_i32_0 : i32, i32
  }
  func.func @transform_4(%arg0: i32) -> (i32, i32) {
    %c0_i32 = arith.constant 0 : i32
    %c0_i32_0 = arith.constant 0 : i32
    %c0_i32_1 = arith.constant 0 : i32
    return %c0_i32, %c0_i32_0 : i32, i32
  }
  func.func @transform_5(%arg0: i32) -> (i32, i32) {
    %c0_i32 = arith.constant 0 : i32
    %c0_i32_0 = arith.constant 0 : i32
    return %c0_i32, %arg0 : i32, i32
  }
}

</mosaic_0001>

<bundles_post_ra>
// kernel: tpu_custom_call.1
= control target key start
LH: loop header
LB: loop body
LE: loop exit
PB: predicated region body
PF: predicated region fallthrough
CT: control target
= control target key end

     0   :  { %10 = vsyncpa [#allocation3], 0  ;;  %s1005_s0 = inlined_call_operand.hbm [shape: f32[17,512], index: 0, kind: input, shape index: {}]   ;;  %s1006_s1 = inlined_call_operand.vmem [shape: f32[8,17], index: 1, kind: input, shape index: {}]   ;;  %s1007_s2 = inlined_call_operand.vmem [shape: f32[24,8], index: 2, kind: input, shape index: {}]   ;;  %s1008_s3 = inlined_call_operand.vmem [shape: f32[24,8], index: 3, kind: input, shape index: {}]   ;;  %s1009_s4 = inlined_call_operand.vmem [shape: f32[8,8], index: 4, kind: input, shape index: {}]   ;;  %s1010_s5 = inlined_call_operand.hbm [shape: f32[8,512], index: 5, kind: output, shape index: {}]  }
   0x1   :  { %12 = vsyncpa [#allocation3 + $0x1], 0 }
   0x2   :  { %13 = vsyncpa [#allocation4], 0 }
   0x3   :  { %15 = vsyncpa [#allocation4 + $0x1], 0  ;;  %s847_s18 = smov 0   ;;  %s849_s19 = smov 0  }
   0x4   :  { %s851_s20 = smov 0   ;;  %s853_s21 = smov 0  }
   0x5 LB: > { %s868_s22 = sadd.s32 4294967295, %s812_s21   ;;  %s617_s23 = sadd.s32 4294967294, %s812_s21   ;;  %s812_s21 = sphi %s853_s21, %s1018_s21   ;;  %s808_s20 = sphi %s851_s20, %s1017_s20   ;;  %s804_s19 = sphi %s849_s19, %s1016_s19   ;;  %s800_s18 = sphi %s847_s18, %s1015_s18  }
   0x6   : > { %s872_s24 = sadd.s32 1, %s812_s21   ;;  %s28_s25 = sadd.s32 1, %s808_s20 }
   0x7   : > { %s25_s26 = ssub.s32 %s812_s21, %s872_s24  ;;  %p35_p0 = scmp.ne.s32.totalorder %s808_s20, %s804_s19 }
   0x8   : > { %p26_p1 = scmp.eq.s32.totalorder %s25_s26, 0  ;;  %p36_p2 = scmp.eq.s32.totalorder %s812_s21, 0 }
   0x9   : > { %p41_p3 = scmp.ne.s32.totalorder %s804_s19, %s800_s18  ;;  %p42_p4 = scmp.eq.s32.totalorder %s868_s22, 0 }
   0xa   : > { %s884_s27 = scalar_select %p26_p1, %s808_s20, %s28_s25  }
   0xb   : > { %p37_p5 = por %p36_p2, %p35_p0  ;;  %p886_p6 = por %p42_p4, %p41_p3 }
   0xc   : > { %p149_p7 = scmp.eq.s32.totalorder %s868_s22, 1  ;;  %p155_p8 = scmp.eq.s32.totalorder %s617_s23, 1 }
   0xd   : > { %p619_p9 = scmp.ge.s32.totalorder %s812_s21, 2  ;;  %p671_p10 = scmp.lt.s32.totalorder %s812_s21, 2 }
   0xe   : > { %p893_p11 = por %p149_p7, %p35_p0  ;;  %p897_p12 = por %p155_p8, %p41_p3 }
   0xf   : > { %s187_s6 = sand.u32 1, %s808_s20   ;;  %s655_s7 = sshll.u32 %s812_s21, 4 }
  0x10   : > { %s657_s8 = smul.u32 48, %s187_s6  ;;  %s196_s11 = scalar_lea.hbm %s1005_s0, %s655_s7 }
  0x11   : > { %p906_p13 = pnand %p671_p10, %p37_p5  ;;  %s197_s13 = sshll.u32 %s196_s11, 4  ;;  %s198_s13 = int_to_ptr.hbm [resolvable:$true] %s197_s13 }
  0x12   : > { %s191_s14 = scalar_lea.vmem [#allocation2], %s657_s8  ;;  %p622_p0 = scmp.ge.s32.totalorder %s812_s21, 1 }
  0x13   : > { %s199_s15 = sshll.u32 %s191_s14, 4  ;;  %s188_s16 = scalar_lea.sflag [#allocation3], %s187_s6  ;;  %s200_s15 = int_to_ptr.vmem [resolvable:$true] %s199_s15 }
  0x14   : > { %s716_s17 = sshra.s32 %s198_s13, 4  ;;  %p720_p2 = pneg %p906_p13  ;;  %s717_s17 = int_to_ptr.hbm [resolvable:$true] %s716_s17 }
  0x15   : > { %s718_s23 = scalar_lea.hbm %s717_s17, 48  ;;  %s723_s7 = scalar_lea.hbm %s1005_s0, 96 }
  0x16   : > { %p719_p1 = scmp.ne.s32.totalorder %s717_s17, %s718_s23  ;;  %p724_p5 = scmp.lt.s32.totalorder %s717_s17, %s1005_s0 }
  0x17   : > { %p725_p7 = scmp.lt.s32.totalorder %s723_s7, %s718_s23 }
  0x18   : > { %p721_p3 = pnand %p720_p2, %p719_p1 }
  0x19   : > { %p726_p8 = por %p725_p7, %p724_p5 }
  0x1a   : > { %p722_p4 = pneg %p721_p3 }
  0x1c   : > { %p727_p10 = pnand %p726_p8, %p722_p4 }
  0x1e   : > { %730 = shalt.err (!%p727_p10)
}
  0x1f   : > { %s814_s6 = smov 512   ;;  %s815_s8 = smov 256  }
  0x20   : > { %s816_s11 = smov 16   ;;  %p207_p1 = scmp.lt.s32.totalorder %s812_s21, 3 }
  0x21   : > { %666 = dma.hbm_to_vmem [thread:$0]  (!%p906_p13), %s198_s13, 768, %s200_s15, %s188_s16, %s814_s6, %s815_s8, %s816_s11  }
  0x22   : > { %p208_p2 = pnand %p622_p0, %p207_p1 }
  0x23   : > { %s925_s14 = sand.u32 (!%p208_p2), 1, %s804_s19  }
  0x24   : > { %211 = sbr.rel (%p208_p2) target bundleno = 494 (0x1ee), region = 40  ;;  %s214_s23 = scalar_lea.sflag (!%p208_p2), [#allocation3], %s925_s14 }
  0x25   : > { %s658_s17 = smul.u32 (!%p208_p2), 48, %s925_s14 }
  0x27   : > { %s217_s25 = scalar_lea.vmem (!%p208_p2), [#allocation2], %s658_s17 }
  0x29   : > { %791 = dma.done.wait (%p886_p6), %s214_s23, 768  }
  0x2a   : > { %793 = vsyncadd (%p886_p6), %s214_s23, 4294966528  ;;  %vm258_vm0 = vcmask 1040384   ;;  %v252_v0 = vld [vmem:[%s217_s25 + $0x20] sm:$0x1]  ;;  %v253_v1 = vld [vmem:[%s217_s25 + $0x28] sm:$0x1] }
  0x2b   : > { %v250_v2 = vld [vmem:[%s217_s25 + $0x10] sm:$0xff]  ;;  %624 = vmatpush.msk.msra.mxu0 %vm258_vm0, %v252_v0  ;;  %626 = vmatpush.msk.msra.mxu1 %vm258_vm0, %v253_v1  ;;  %v251_v3 = vld [vmem:[%s217_s25 + $0x18] sm:$0xff]  ;;  %v248_v4 = vld [vmem:[%s217_s25] sm:$0xff]  ;;  %vm254_vm1 = vcmask 138240   ;;  %vm357_vm11 = vcmask 64512   ;;  %s623_s13 = sshll.u32 %s925_s14, 4 }
  0x2c   : > { %v249_v5 = vld [vmem:[%s217_s25 + $0x8] sm:$0xff]  ;;  %v247_v6 = vld [vmem:[%s1006_s1] sm:$0xff]  ;;  %v356_v41 = vld [vmem:[%s1008_s3 + $0x10] sm:$0xff]  ;;  %s656_s28 = sshll.u32 %s868_s22, 4  ;;  %s244_s7 = scalar_lea.vmem [#allocation5], %s623_s13 }
  0x2d   : > { %279 = vmatpush.msra.mxu0 %v250_v2  ;;  %299 = vmatpush.msra.mxu1 %v251_v3  ;;  %v354_v36 = vld [vmem:[%s1008_s3] sm:$0xff]  ;;  %v355_v39 = vld [vmem:[%s1008_s3 + $0x8] sm:$0xff]  ;;  %v353_v42 = vld [vmem:[%s1007_s2 + $0x10] sm:$0xff]  ;;  %s542_s26 = scalar_lea.hbm %s1010_s5, %s656_s28  ;;  %s544_s9 = sshll.u32 %s244_s7, 4  ;;  %s545_s9 = int_to_ptr.vmem [resolvable:$true] %s544_s9 }
  0x2e   : > { %v351_v38 = vld [vmem:[%s1007_s2] sm:$0xff]  ;;  %v352_v40 = vld [vmem:[%s1007_s2 + $0x8] sm:$0xff]  ;;  %s546_s10 = sshll.u32 %s542_s26, 4  ;;  %s531_s6 = scalar_lea.sflag [#allocation4], %s925_s14  ;;  %s547_s10 = int_to_ptr.hbm [resolvable:$true] %s546_s10 }
  0x2f   : > { %280 = vmatpush.msra.mxu0 %v248_v4  ;;  %300 = vmatpush.msra.mxu1 %v249_v5  ;;  %v484_v0 = vld [vmem:[%s1009_s4] sm:$0xff]  ;;  %s760_s8 = sshra.s32 %s547_s10, 4  ;;  %s766_s23 = scalar_lea.hbm %s1010_s5, 32  ;;  %s761_s8 = int_to_ptr.hbm [resolvable:$true] %s760_s8 }
  0x30   : > { %625 = vmatmul.msk.f32.vlgmr.msra.gmra.mxu0 %vm254_vm1, %v247_v6  ;;  %627 = vmatmul.msk.f32.vlgmr.msra.gmra.mxu1 %vm254_vm1, %v247_v6  ;;  %s762_s11 = scalar_lea.hbm %s761_s8, 16  ;;  %p767_p3 = scmp.lt.s32.totalorder %s761_s8, %s1010_s5 }
  0x31   : > { %p763_p6 = scmp.ne.s32.totalorder %s761_s8, %s762_s11  ;;  %p768_p4 = scmp.lt.s32.totalorder %s766_s23, %s762_s11 }
  0x33   : > { %p764_p13 = pnand %p763_p6, %p893_p11  ;;  %p769_p5 = por %p768_p4, %p767_p3 }
  0x35   : > { %p765_p0 = pneg %p764_p13 }
  0x37   : > { %p770_p7 = pnand %p769_p5, %p765_p0 }
  0xad   : > { %v282_v7 = vpop.f32.mrf.mxu0  ;;  %v302_v8 = vpop.f32.mrf.mxu1 }
  0xae   : > { %v628_v9 = vmul.f32 -1.442695, %v282_v7  ;;  %v629_v10 = vmul.f32 -1.442695, %v302_v8 }
  0xb0   : > { %708 = vpow2.f32 %v628_v9 }
  0xb1   : > { %710 = vpow2.f32 %v629_v10 }
  0xb6   : > { %v709_v11 = vpop.eup %708 }
  0xb7   : > { %v711_v12 = vpop.eup %710  ;;  %v311_v13 = vadd.f32 1.0, %v709_v11 }
  0xb8   : > { %v312_v14 = vadd.f32 1.0, %v711_v12 }
  0xb9   : > { %712 = vrcp.f32 %v311_v13  ;;  %v324_v20 = vand.u32 2147483648, %v311_v13  ;;  %v322_v23 = vand.u32 2147483647, %v311_v13  ;;  %vm318_vm4 = vweird.f32 %v311_v13 }
  0xba   : > { %714 = vrcp.f32 %v312_v14  ;;  %v339_v24 = vand.u32 2147483648, %v312_v14  ;;  %v337_v26 = vand.u32 2147483647, %v312_v14  ;;  %vm333_vm6 = vweird.f32 %v312_v14 }
  0xbb   : > { %v325_v28 = vor.u32 1.1754944e-38, %v324_v20  ;;  %vm323_vm7 = vcmp.eq.f32.partialorder %v322_v23, 8.507059e+37 }
  0xbc   : > { %v340_v31 = vor.u32 1.1754944e-38, %v339_v24  ;;  %vm338_vm9 = vcmp.eq.f32.partialorder %v337_v26, 8.507059e+37 }
  0xbf   : > { %v713_v15 = vpop.eup %712 }
  0xc0   : > { %v715_v16 = vpop.eup %714  ;;  %v314_v17 = vmul.f32 %v713_v15, %v311_v13  ;;  %vm319_vm2 = vweird.f32 %v713_v15 }
  0xc1   : > { %v329_v18 = vmul.f32 %v715_v16, %v312_v14  ;;  %vm334_vm3 = vweird.f32 %v715_v16  ;;  %vm320_vm5 = vmor %vm318_vm4, %vm319_vm2 }
  0xc2   : > { %v315_v19 = vsub.f32 1.0, %v314_v17  ;;  %vm335_vm8 = vmor %vm333_vm6, %vm334_vm3 }
  0xc3   : > { %v330_v21 = vsub.f32 1.0, %v329_v18 }
  0xc4   : > { %v316_v22 = vmul.f32 %v713_v15, %v315_v19 }
  0xc5   : > { %v331_v25 = vmul.f32 %v715_v16, %v330_v21 }
  0xc6   : > { %v317_v27 = vadd.f32 %v713_v15, %v316_v22 }
  0xc7   : > { %v332_v29 = vadd.f32 %v715_v16, %v331_v25 }
  0xc8   : > { %v321_v30 = vsel %vm320_vm5, %v713_v15, %v317_v27 }
  0xc9   : > { %v326_v32 = vsel %vm323_vm7, %v325_v28, %v321_v30  ;;  %v336_v33 = vsel %vm335_vm8, %v715_v16, %v332_v29 }
  0xca   : > { %vm343_vm10 = vcmp.ge.f32.partialorder %v326_v32, 0.5  ;;  %v341_v34 = vsel %vm338_vm9, %v340_v31, %v336_v33  ;;  %v347_v35 = vsub.f32 1.0, %v326_v32 }
  0xcb   : > { %640 = vmatpush.msk.msrb.mxu0 %vm343_vm10, %v326_v32  ;;  %vm344_vm12 = vcmp.ge.f32.partialorder %v341_v34, 0.5  ;;  %vm630_vm13 = vmneg %vm343_vm10  ;;  %v348_v37 = vsub.f32 1.0, %v341_v34 }
  0xcc   : > { %644 = vmatpush.msk.msrb.mxu1 %vm344_vm12, %v341_v34  ;;  %631 = vmatpush.msk.msra.mxu2 %vm630_vm13, %v347_v35  ;;  %vm635_vm14 = vmneg %vm344_vm12 }
  0xcd   : > { %636 = vmatpush.msk.msra.mxu3 %vm635_vm14, %v348_v37  ;;  %632 = vmatmul.msk.f32.vlgmr.msra.gmra.mxu2 %vm357_vm11, %v354_v36 }
  0xce   : > { %637 = vmatmul.msk.f32.vlgmr.msra.gmra.mxu3 %vm357_vm11, %v354_v36  ;;  %641 = vmatmul.msk.f32.vlgmr.msrb.gmra.mxu0 %vm357_vm11, %v351_v38 }
  0xcf   : > { %645 = vmatmul.msk.f32.vlgmr.msrb.gmra.mxu1 %vm357_vm11, %v351_v38 }
  0xd5   : > { %633 = vmatmul.msk.f32.gmra.mxu2 %vm357_vm11, %v355_v39 }
  0xd6   : > { %638 = vmatmul.msk.f32.gmra.mxu3 %vm357_vm11, %v355_v39  ;;  %642 = vmatmul.msk.f32.gmra.mxu0 %vm357_vm11, %v352_v40 }
  0xd7   : > { %646 = vmatmul.msk.f32.gmra.mxu1 %vm357_vm11, %v352_v40 }
  0xdd   : > { %634 = vmatmul.msk.f32.gmra.mxu2 %vm357_vm11, %v356_v41 }
  0xde   : > { %639 = vmatmul.msk.f32.gmra.mxu3 %vm357_vm11, %v356_v41  ;;  %643 = vmatmul.msk.f32.gmra.mxu0 %vm357_vm11, %v353_v42 }
  0xdf   : > { %647 = vmatmul.msk.f32.gmra.mxu1 %vm357_vm11, %v353_v42 }
 0x14b   : > { %v445_v43 = vpop.f32.mrf.mxu0 }
 0x14c   : > { %v471_v44 = vpop.f32.mrf.mxu1 }
 0x150   : > { %v384_v45 = vpop.f32.mrf.mxu2 }
 0x151   : > { %v410_v46 = vpop.f32.mrf.mxu3  ;;  %v446_v54 = vadd.f32 %v445_v43, %v384_v45 }
 0x152   : > { %v472_v56 = vadd.f32 %v471_v44, %v410_v46 }
 0x153   : > { %v448_v47 = vpop.f32.mrf.mxu0 }
 0x154   : > { %v474_v48 = vpop.f32.mrf.mxu1 }
 0x158   : > { %v387_v49 = vpop.f32.mrf.mxu2 }
 0x159   : > { %v413_v50 = vpop.f32.mrf.mxu3  ;;  %v449_v51 = vadd.f32 %v448_v47, %v387_v49 }
 0x15a   : > { %v475_v52 = vadd.f32 %v474_v48, %v413_v50 }
 0x15b   : > { %v451_v53 = vpop.f32.mrf.mxu0  ;;  %v480_v58 = vmul.f32 %v449_v51, %v446_v54 }
 0x15c   : > { %v477_v55 = vpop.f32.mrf.mxu1  ;;  %v481_v61 = vmul.f32 %v475_v52, %v472_v56 }
 0x160   : > { %v390_v57 = vpop.f32.mrf.mxu2 }
 0x161   : > { %v416_v59 = vpop.f32.mrf.mxu3  ;;  %v452_v60 = vadd.f32 %v451_v53, %v390_v57 }
 0x162   : > { %v478_v62 = vadd.f32 %v477_v55, %v416_v59 }
 0x163   : > { %v482_v63 = vmul.f32 %v480_v58, %v452_v60 }
 0x164   : > { %v483_v1 = vmul.f32 %v481_v61, %v478_v62 }
 0x165   : > { %503 = vmatpush.msrb.mxu2 %v482_v63 }
 0x166   : > { %523 = vmatpush.msrb.mxu3 %v483_v1  ;;  %648 = vmatmul.msk.f32.vlgmr.msrb.gmra.mxu2 %vm357_vm11, %v484_v0 }
 0x167   : > { %649 = vmatmul.msk.f32.vlgmr.msrb.gmra.mxu3 %vm357_vm11, %v484_v0 }
 0x1e9   : > { %v505_v2 = vpop.f32.mrf.mxu2 }
 0x1ea   : > { %528 = vst [vmem:[%s244_s7] sm:$0xff] %v505_v2  ;;  %v525_v3 = vpop.f32.mrf.mxu3 }
 0x1eb   : > { %529 = vst [vmem:[%s244_s7 + $0x8] sm:$0xff] %v525_v3 }
 0x1ec   : > { %773 = shalt.err (!%p770_p7)
}
 0x1ed   : > { %661 = dma.vmem_to_hbm [thread:$0]  (%p893_p11), %s545_s9, 256, %s547_s10, %s531_s6  }
 0x1ee PF: > { %s558_s14 = sand.u32 1, %s800_s18   ;;  %p668_p8 = pnand %p619_p9, %p897_p12 }
 0x1ef   : > { %s559_s13 = scalar_lea.sflag [#allocation4], %s558_s14 }
 0x1f0   : > { %p669_p10 = pneg %p668_p8 }
 0x1f2   : > { %795 = dma.done.wait (%p669_p10), %s559_s13, 256  }
 0x1f3   : > { %797 = vsyncadd (%p669_p10), %s559_s13, 4294967040  ;;  %p18_p1 = scmp.ge.s32.totalorder %s872_s24, 4   ;;  %s1015_s18 = smov %s804_s19 }
 0x1f4   : > { %s1016_s19 = smov %s808_s20  ;;  %s1017_s20 = smov %s884_s27 }
 0x1f5   : > { %s1018_s21 = smov %s872_s24  ;;  %20 = sbr.rel (!%p18_p1) target bundleno = 5 (0x5), region = 85 }
 0x1fa   :  { %565 = vsyncpa [#allocation3], 1 }
 0x1fb   :  { %567 = vsyncpa [#allocation3 + $0x1], 1 }
 0x1fc   :  { %568 = vsyncpa [#allocation4], 1 }
 0x1fd   :  { %570 = vsyncpa [#allocation4 + $0x1], 1 }

</bundles_post_ra>
